<compile_context>
chip_gen: v7x
topology: tpu7x:2x2x1
jax: 0.10.0
libtpu: 0.0.40
codegen_flags: <defaults>
</compile_context>

<pallas_src>
import jax
import jax.numpy as jnp
from jax.experimental import pallas as pl
from jax.experimental.pallas import tpu as pltpu

EPS_BN = 1e-5        # nn.BatchNorm1d default eps
EPS_NORM = 1e-12     # F.normalize default eps
LEAKY_SLOPE = 0.1    # nn.LeakyReLU(0.1) in the reference module


# --------------------------------------------------------------------------
# Kernel
# --------------------------------------------------------------------------
def siamese_kernel(a_ref, n_ref,
                   w1, b1, w2, b2, w3, b3, w4, b4,
                   a_out_ref, n_out_ref):
    b = a_ref.shape[0]
    # Row-stack anchor + negative in VMEM: one MXU pass per layer over 2B rows,
    # weights read from VMEM once.
    x = jnp.concatenate([a_ref[...], n_ref[...]], axis=0)   # (2B, in) f32

    def linear(h, w_ref, b_ref):
        # bf16 operands for the MXU, f32 accumulation, f32 bias add.
        return jnp.dot(h.astype(jnp.bfloat16), w_ref[...],
                       preferred_element_type=jnp.float32) + b_ref[...]

    def leaky_relu(h):
        # max(h, a*h) == LeakyReLU(a) for a in (0,1): vmul + vmax, no select.
        return jnp.maximum(h, LEAKY_SLOPE * h)

    h = leaky_relu(linear(x, w1, b1))   # fc1 + folded bn1 + LeakyReLU
    # Dropout(0.3): identity in eval mode.
    h = leaky_relu(linear(h, w2, b2))   # fc2 + folded bn2 + LeakyReLU
    h = leaky_relu(linear(h, w3, b3))   # fc3 + folded bn3 + LeakyReLU
    h = linear(h, w4, b4)               # fc4 + folded bn4 (no activation)

    # F.normalize(p=2, dim=1, eps=1e-12) == x * rsqrt(max(sum(x^2), eps^2))
    sq = jnp.sum(h * h, axis=1, keepdims=True)               # XLU reduce
    inv = jax.lax.rsqrt(jnp.maximum(sq, EPS_NORM * EPS_NORM))
    y = h * inv

    a_out_ref[...] = y[:b].astype(a_out_ref.dtype)            # sublane-aligned split
    n_out_ref[...] = y[b:].astype(n_out_ref.dtype)


# --------------------------------------------------------------------------
# Parameter construction (Linear init + BN defaults, BN folded into Linear)
# --------------------------------------------------------------------------
def _fold_bn(w, b, gamma, beta, mean, var):
    """W' = W * gamma/sqrt(var+eps);  b' = (b - mean) * gamma/sqrt(var+eps) + beta."""
    scale = gamma * jax.lax.rsqrt(var + EPS_BN)               # (1, dout)
    return w * scale, (b - mean) * scale + beta


def init_params(key, input_size, hidden_size):
    """Mirror nn.Linear init + BatchNorm1d defaults, fold BN into Linear.

    Returns 8 f32 arrays (w1, b1, ..., w4, b4); weights transposed to (in, out),
    biases shaped (1, out). Cast weights to bf16 with to_kernel_params().
    """
    layer_dims = [
        (input_size, hidden_size),             # fc1 / bn1
        (hidden_size, hidden_size),            # fc2 / bn2
        (hidden_size, hidden_size // 2),       # fc3 / bn3
        (hidden_size // 2, hidden_size // 2),  # fc4 / bn4
    ]
    params = []
    for din, dout in layer_dims:
        key, kw, kb = jax.random.split(key, 3)
        bound = 1.0 / (din ** 0.5)
        w = jax.random.uniform(kw, (din, dout), jnp.float32, -bound, bound)
        b = jax.random.uniform(kb, (1, dout), jnp.float32, -bound, bound)
        gamma = jnp.ones((1, dout), jnp.float32)
        beta = jnp.zeros((1, dout), jnp.float32)
        rmean = jnp.zeros((1, dout), jnp.float32)
        rvar = jnp.ones((1, dout), jnp.float32)
        w_f, b_f = _fold_bn(w, b, gamma, beta, rmean, rvar)
        params += [w_f, b_f]
    return tuple(params)


def to_kernel_params(params_f32):
    """Weights (even indices) -> bf16 for MXU-native half-size DMA; biases stay f32."""
    return tuple(p.astype(jnp.bfloat16) if i % 2 == 0 else p
                 for i, p in enumerate(params_f32))


# --------------------------------------------------------------------------
# Wrapper
# --------------------------------------------------------------------------
@jax.jit
def siamese_forward(anchor, negative, params):
    assert anchor.shape == negative.shape, "anchor/negative shapes must match"
    batch, in_dim = anchor.shape
    assert batch % 8 == 0, "batch must be a multiple of 8 (f32 sublane tile)"

    d1 = params[0].shape[1]      # hidden
    d3 = params[4].shape[1]      # hidden // 2
    out_dim = params[6].shape[1]

    flops = 2 * (2 * batch) * (in_dim * d1 + d1 * d1 + d1 * d3 + d3 * d3)
    bytes_accessed = (sum(int(p.size) * p.dtype.itemsize for p in params)
                      + 2 * anchor.size * anchor.dtype.itemsize
                      + 2 * batch * out_dim * 4)
    n_inputs = 2 + len(params)

    # Gridless: everything fits VMEM at these sizes. For large batch, switch to
    # a batch grid (block 512-2048 rows, weights with constant index_map) and
    # dimension_semantics=("parallel",) so v7x shards rows across its 2 TCs.
    return pl.pallas_call(
        siamese_kernel,
        out_shape=(jax.ShapeDtypeStruct((batch, out_dim), jnp.float32),
                   jax.ShapeDtypeStruct((batch, out_dim), jnp.float32)),
        in_specs=[pl.BlockSpec(memory_space=pltpu.MemorySpace.VMEM)] * n_inputs,
        out_specs=(pl.BlockSpec(memory_space=pltpu.MemorySpace.VMEM),
                   pl.BlockSpec(memory_space=pltpu.MemorySpace.VMEM)),
        cost_estimate=pl.CostEstimate(flops=flops,
                                      transcendentals=2 * batch,
                                      bytes_accessed=bytes_accessed),
    )(anchor, negative, *params)


# --------------------------------------------------------------------------
# Pure-JAX reference (f32) for semantic validation
# --------------------------------------------------------------------------
def reference_forward(anchor, negative, params_f32):
    def encode(x):
        h = x
        for i in range(0, 8, 2):
            w, b = params_f32[i], params_f32[i + 1]
            h = h @ w + b
            if i < 6:                                   # no activation after fc4+bn4
                h = jnp.where(h > 0, h, LEAKY_SLOPE * h)
        norm = jnp.sqrt(jnp.sum(h * h, axis=1, keepdims=True))
        return h / jnp.maximum(norm, EPS_NORM)
    return encode(anchor), encode(negative)


if __name__ == "__main__":
    input_size = 112
    hidden_size = 256
    batch = 8

    key = jax.random.PRNGKey(0)
    kp, ka, kn = jax.random.split(key, 3)

    params_f32 = init_params(kp, input_size, hidden_size)
    params = to_kernel_params(params_f32)
    anchor = jax.random.normal(ka, (batch, input_size), jnp.float32)
    negative = jax.random.normal(kn, (batch, input_size), jnp.float32)

    a_out, n_out = siamese_forward(anchor, negative, params)
    jax.block_until_ready((a_out, n_out))

    assert a_out.shape == (batch, hidden_size // 2)
    assert n_out.shape == (batch, hidden_size // 2)
    # rows are L2-normalized
    assert jnp.allclose(jnp.linalg.norm(a_out, axis=1), 1.0, atol=1e-4)
    assert jnp.allclose(jnp.linalg.norm(n_out, axis=1), 1.0, atol=1e-4)
    # semantic parity vs f32 reference (bf16 MXU matmul -> loose tolerance)
    a_ref, n_ref = reference_forward(anchor, negative, params_f32)
    assert jnp.allclose(a_out, a_ref, atol=2e-2, rtol=2e-2)
    assert jnp.allclose(n_out, n_ref, atol=2e-2, rtol=2e-2)

    print("KERNEL_OK")
</pallas_src>

<mosaic_0001>
module attributes {stable_mosaic.version = 11 : i64} {
  func.func @siamese_kernel(%arg0: memref<8x112xf32, #tpu.memory_space<vmem>>, %arg1: memref<8x112xf32, #tpu.memory_space<vmem>>, %arg2: memref<112x256xbf16, #tpu.memory_space<vmem>>, %arg3: memref<1x256xf32, #tpu.memory_space<vmem>>, %arg4: memref<256x256xbf16, #tpu.memory_space<vmem>>, %arg5: memref<1x256xf32, #tpu.memory_space<vmem>>, %arg6: memref<256x128xbf16, #tpu.memory_space<vmem>>, %arg7: memref<1x128xf32, #tpu.memory_space<vmem>>, %arg8: memref<128x128xbf16, #tpu.memory_space<vmem>>, %arg9: memref<1x128xf32, #tpu.memory_space<vmem>>, %arg10: memref<8x128xf32, #tpu.memory_space<vmem>>, %arg11: memref<8x128xf32, #tpu.memory_space<vmem>>) attributes {dimension_semantics = [], scalar_prefetch = 0 : i64, scratch_operands = 0 : i64, tpu.core_type = #tpu.core_type<tc>} {
    %c0 = arith.constant 0 : index
    %c0_0 = arith.constant 0 : index
    %0 = vector.load %arg0[%c0, %c0_0] : memref<8x112xf32, #tpu.memory_space<vmem>>, vector<8x112xf32>
    %c0_1 = arith.constant 0 : index
    %c0_2 = arith.constant 0 : index
    %1 = vector.load %arg1[%c0_1, %c0_2] : memref<8x112xf32, #tpu.memory_space<vmem>>, vector<8x112xf32>
    %2 = tpu.concatenate %0, %1 in 0 : vector<8x112xf32>, vector<8x112xf32> -> vector<16x112xf32>
    %3 = arith.truncf %2 : vector<16x112xf32> to vector<16x112xbf16>
    %c0_3 = arith.constant 0 : index
    %c0_4 = arith.constant 0 : index
    %4 = vector.load %arg2[%c0_3, %c0_4] : memref<112x256xbf16, #tpu.memory_space<vmem>>, vector<112x256xbf16>
    %cst = arith.constant dense<0.000000e+00> : vector<16x256xf32>
    %5 = tpu.matmul %3, %4, %cst {dimension_numbers = #tpu.dot_dimension_numbers<[1], [0], [0], [1], [0, 0, 1, 1], [], []>} : vector<16x112xbf16>, vector<112x256xbf16>, vector<16x256xf32> -> vector<16x256xf32>
    %c0_5 = arith.constant 0 : index
    %c0_6 = arith.constant 0 : index
    %6 = vector.load %arg3[%c0_5, %c0_6] : memref<1x256xf32, #tpu.memory_space<vmem>>, vector<1x256xf32>
    %7 = vector.broadcast %6 : vector<1x256xf32> to vector<16x256xf32>
    %8 = arith.addf %5, %7 : vector<16x256xf32>
    %cst_7 = arith.constant 1.000000e-01 : f32
    %9 = vector.broadcast %cst_7 : f32 to vector<16x256xf32>
    %10 = arith.mulf %9, %8 : vector<16x256xf32>
    %11 = arith.maximumf %8, %10 : vector<16x256xf32>
    %12 = arith.truncf %11 : vector<16x256xf32> to vector<16x256xbf16>
    %c0_8 = arith.constant 0 : index
    %c0_9 = arith.constant 0 : index
    %13 = vector.load %arg4[%c0_8, %c0_9] : memref<256x256xbf16, #tpu.memory_space<vmem>>, vector<256x256xbf16>
    %cst_10 = arith.constant dense<0.000000e+00> : vector<16x256xf32>
    %14 = tpu.matmul %12, %13, %cst_10 {dimension_numbers = #tpu.dot_dimension_numbers<[1], [0], [0], [1], [0, 0, 1, 1], [], []>} : vector<16x256xbf16>, vector<256x256xbf16>, vector<16x256xf32> -> vector<16x256xf32>
    %c0_11 = arith.constant 0 : index
    %c0_12 = arith.constant 0 : index
    %15 = vector.load %arg5[%c0_11, %c0_12] : memref<1x256xf32, #tpu.memory_space<vmem>>, vector<1x256xf32>
    %16 = vector.broadcast %15 : vector<1x256xf32> to vector<16x256xf32>
    %17 = arith.addf %14, %16 : vector<16x256xf32>
    %cst_13 = arith.constant 1.000000e-01 : f32
    %18 = vector.broadcast %cst_13 : f32 to vector<16x256xf32>
    %19 = arith.mulf %18, %17 : vector<16x256xf32>
    %20 = arith.maximumf %17, %19 : vector<16x256xf32>
    %21 = arith.truncf %20 : vector<16x256xf32> to vector<16x256xbf16>
    %c0_14 = arith.constant 0 : index
    %c0_15 = arith.constant 0 : index
    %22 = vector.load %arg6[%c0_14, %c0_15] : memref<256x128xbf16, #tpu.memory_space<vmem>>, vector<256x128xbf16>
    %cst_16 = arith.constant dense<0.000000e+00> : vector<16x128xf32>
    %23 = tpu.matmul %21, %22, %cst_16 {dimension_numbers = #tpu.dot_dimension_numbers<[1], [0], [0], [1], [0, 0, 1, 1], [], []>} : vector<16x256xbf16>, vector<256x128xbf16>, vector<16x128xf32> -> vector<16x128xf32>
    %c0_17 = arith.constant 0 : index
    %c0_18 = arith.constant 0 : index
    %24 = vector.load %arg7[%c0_17, %c0_18] : memref<1x128xf32, #tpu.memory_space<vmem>>, vector<1x128xf32>
    %25 = vector.broadcast %24 : vector<1x128xf32> to vector<16x128xf32>
    %26 = arith.addf %23, %25 : vector<16x128xf32>
    %cst_19 = arith.constant 1.000000e-01 : f32
    %27 = vector.broadcast %cst_19 : f32 to vector<16x128xf32>
    %28 = arith.mulf %27, %26 : vector<16x128xf32>
    %29 = arith.maximumf %26, %28 : vector<16x128xf32>
    %30 = arith.truncf %29 : vector<16x128xf32> to vector<16x128xbf16>
    %c0_20 = arith.constant 0 : index
    %c0_21 = arith.constant 0 : index
    %31 = vector.load %arg8[%c0_20, %c0_21] : memref<128x128xbf16, #tpu.memory_space<vmem>>, vector<128x128xbf16>
    %cst_22 = arith.constant dense<0.000000e+00> : vector<16x128xf32>
    %32 = tpu.matmul %30, %31, %cst_22 {dimension_numbers = #tpu.dot_dimension_numbers<[1], [0], [0], [1], [0, 0, 1, 1], [], []>} : vector<16x128xbf16>, vector<128x128xbf16>, vector<16x128xf32> -> vector<16x128xf32>
    %c0_23 = arith.constant 0 : index
    %c0_24 = arith.constant 0 : index
    %33 = vector.load %arg9[%c0_23, %c0_24] : memref<1x128xf32, #tpu.memory_space<vmem>>, vector<1x128xf32>
    %34 = vector.broadcast %33 : vector<1x128xf32> to vector<16x128xf32>
    %35 = arith.addf %32, %34 : vector<16x128xf32>
    %36 = arith.mulf %35, %35 : vector<16x128xf32>
    %cst_25 = arith.constant dense<0.000000e+00> : vector<16xf32>
    %37 = vector.multi_reduction <add>, %36, %cst_25 [1] : vector<16x128xf32> to vector<16xf32>
    %38 = vector.shape_cast %37 : vector<16xf32> to vector<16x1xf32>
    %cst_26 = arith.constant 1.000000e-24 : f32
    %39 = vector.broadcast %cst_26 : f32 to vector<16x1xf32>
    %40 = arith.maximumf %38, %39 : vector<16x1xf32>
    %41 = math.rsqrt %40 : vector<16x1xf32>
    %42 = vector.broadcast %41 : vector<16x1xf32> to vector<16x128xf32>
    %43 = arith.mulf %35, %42 : vector<16x128xf32>
    %44 = vector.extract_strided_slice %43 {offsets = [0, 0], sizes = [8, 128], strides = [1, 1]} : vector<16x128xf32> to vector<8x128xf32>
    %c0_27 = arith.constant 0 : index
    %c0_28 = arith.constant 0 : index
    %45 = vector.load %arg10[%c0_27, %c0_28] : memref<8x128xf32, #tpu.memory_space<vmem>>, vector<8x128xf32>
    tpu.vector_store %arg10[%c0_27, %c0_28], %44 {strides = array<i32>} : memref<8x128xf32, #tpu.memory_space<vmem>>, vector<8x128xf32>,
    %46 = vector.extract_strided_slice %43 {offsets = [8, 0], sizes = [8, 128], strides = [1, 1]} : vector<16x128xf32> to vector<8x128xf32>
    %c0_29 = arith.constant 0 : index
    %c0_30 = arith.constant 0 : index
    %47 = vector.load %arg11[%c0_29, %c0_30] : memref<8x128xf32, #tpu.memory_space<vmem>>, vector<8x128xf32>
    tpu.vector_store %arg11[%c0_29, %c0_30], %46 {strides = array<i32>} : memref<8x128xf32, #tpu.memory_space<vmem>>, vector<8x128xf32>,
    return
  }
}

</mosaic_0001>

<bundles_post_ra>
// kernel: siamese_forward.1
= control target key start
LH: loop header
LB: loop body
LE: loop exit
PB: predicated region body
PF: predicated region fallthrough
CT: control target
= control target key end

     0   :  { %17 = vsyncpa [#allocation3], 0  ;;  %s1483_s0 = inlined_call_operand.hbm [shape: f32[8,112], index: 0, kind: input, shape index: {}]   ;;  %s1484_s1 = inlined_call_operand.hbm [shape: f32[8,112], index: 1, kind: input, shape index: {}]   ;;  %s1485_s2 = inlined_call_operand.hbm [shape: bf16[112,256], index: 2, kind: input, shape index: {}]   ;;  %s1486_s3 = inlined_call_operand.vmem [shape: f32[1,256], index: 3, kind: input, shape index: {}]   ;;  %s1487_s4 = inlined_call_operand.hbm [shape: bf16[256,256], index: 4, kind: input, shape index: {}]   ;;  %s1488_s5 = inlined_call_operand.vmem [shape: f32[1,256], index: 5, kind: input, shape index: {}]   ;;  %s1489_s6 = inlined_call_operand.hbm [shape: bf16[256,128], index: 6, kind: input, shape index: {}]   ;;  %s1490_s7 = inlined_call_operand.vmem [shape: f32[1,128], index: 7, kind: input, shape index: {}]   ;;  %s1491_s8 = inlined_call_operand.hbm [shape: bf16[128,128], index: 8, kind: input, shape index: {}]   ;;  %s1492_s9 = inlined_call_operand.vmem [shape: f32[1,128], index: 9, kind: input, shape index: {}]   ;;  %s1493_s10 = inlined_call_operand.hbm [shape: f32[8,128], index: 10, kind: output, shape index: {0}]   ;;  %s1494_s11 = inlined_call_operand.hbm [shape: f32[8,128], index: 11, kind: output, shape index: {1}]  }
   0x1   :  { %18 = vsyncpa [#allocation6], 0 }
   0x2   :  { %19 = vsyncpa [#allocation9], 0 }
   0x3   :  { %20 = vsyncpa [#allocation12], 0 }
   0x4   :  { %21 = vsyncpa [#allocation4], 0 }
   0x5   :  { %22 = vsyncpa [#allocation15], 0  ;;  %s1294_s17 = smov [#allocation5]   ;;  %s1106_s21 = scalar_lea.hbm %s1484_s1, 128 }
   0x6   :  { %s39_s18 = sshll.u32 %s1294_s17, 4  ;;  %p1107_p0 = scmp.ne.s32.totalorder %s1484_s1, %s1106_s21  ;;  %s40_s18 = int_to_ptr.vmem [resolvable:$true] %s39_s18 }
   0x7   :  { %p1110_p1 = scmp.lt.u32.totalorder %s1106_s21, %s1484_s1 }
   0x9   :  { %p1112_p2 = pnand %p1110_p1, %p1107_p0 }
   0xb   :  { %1115 = shalt.err (!%p1112_p2)
}
   0xc   :  { %s1116_s26 = scalar_lea.vmem %s40_s18, 128  ;;  %p1121_p4 = scmp.lt.s32.totalorder %s40_s18, %s40_s18 }
   0xd   :  { %p1117_p3 = scmp.ne.s32.totalorder %s40_s18, %s1116_s26  ;;  %p1122_p5 = scmp.lt.s32.totalorder %s1116_s26, %s1116_s26 }
   0xf   :  { %p1123_p6 = por %p1122_p5, %p1121_p4 }
  0x11   :  { %p1124_p7 = pnand %p1123_p6, %p1117_p3 }
  0x13   :  { %1127 = shalt.err (!%p1124_p7)
}
  0x14   :  { %42 = dma.hbm_to_vmem [thread:$0]  %s1484_s1, 128, %s40_s18, [#allocation6]  }
  0x15   :  { %s1295_s29 = smov [#allocation8]   ;;  %s1296_s12 = smov [#allocation2]  }
  0x16   :  { %s62_s30 = sshll.u32 %s1295_s29, 4  ;;  %s29_s13 = sshll.u32 %s1296_s12, 4  ;;  %s63_s30 = int_to_ptr.vmem [resolvable:$true] %s62_s30  ;;  %s30_s13 = int_to_ptr.vmem [resolvable:$true] %s29_s13 }
  0x17   :  { %s1128_s16 = scalar_lea.hbm %s1487_s4, 4096 }
  0x18   :  { %p1129_p8 = scmp.ne.s32.totalorder %s1487_s4, %s1128_s16  ;;  %p1132_p9 = scmp.lt.u32.totalorder %s1128_s16, %s1487_s4 }
  0x1a   :  { %p1134_p10 = pnand %p1132_p9, %p1129_p8 }
  0x1c   :  { %1137 = shalt.err (!%p1134_p10)
}
  0x1d   :  { %s1138_s1 = scalar_lea.vmem %s63_s30, 4096  ;;  %p1143_p12 = scmp.lt.s32.totalorder %s63_s30, %s63_s30 }
  0x1e   :  { %p1139_p11 = scmp.ne.s32.totalorder %s63_s30, %s1138_s1  ;;  %p1144_p13 = scmp.lt.s32.totalorder %s1138_s1, %s1138_s1 }
  0x20   :  { %p1145_p0 = por %p1144_p13, %p1143_p12 }
  0x22   :  { %p1146_p1 = pnand %p1145_p0, %p1139_p11 }
  0x24   :  { %1149 = shalt.err (!%p1146_p1)
}
  0x25   :  { %s1297_s18 = smov 128   ;;  %s1298_s22 = smov 8  }
  0x26   :  { %68 = dma.hbm_to_vmem [thread:$0]  %s1487_s4, 4096, %s63_s30, [#allocation9], %s1297_s18, %s1297_s18, %s1298_s22  }
  0x27   :  { %s1150_s27 = scalar_lea.hbm %s1483_s0, 128 }
  0x28   :  { %p1151_p2 = scmp.ne.s32.totalorder %s1483_s0, %s1150_s27  ;;  %p1154_p3 = scmp.lt.u32.totalorder %s1150_s27, %s1483_s0 }
  0x2a   :  { %p1156_p4 = pnand %p1154_p3, %p1151_p2 }
  0x2c   :  { %1159 = shalt.err (!%p1156_p4)
}
  0x2d   :  { %s1160_s15 = scalar_lea.vmem %s30_s13, 128  ;;  %p1165_p6 = scmp.lt.s32.totalorder %s30_s13, %s30_s13 }
  0x2e   :  { %p1161_p5 = scmp.ne.s32.totalorder %s30_s13, %s1160_s15  ;;  %p1166_p7 = scmp.lt.s32.totalorder %s1160_s15, %s1160_s15 }
  0x30   :  { %p1167_p8 = por %p1166_p7, %p1165_p6 }
  0x32   :  { %p1168_p9 = pnand %p1167_p8, %p1161_p5 }
  0x34   :  { %1171 = shalt.err (!%p1168_p9)
}
  0x35   :  { %32 = dma.hbm_to_vmem [thread:$0]  %s1483_s0, 128, %s30_s13, [#allocation3]  }
  0x36   :  { %s1299_s16 = smov [#allocation7]   ;;  %s1300_s19 = smov [#allocation10]  }
  0x37   :  { %s48_s17 = sshll.u32 %s1299_s16, 4  ;;  %s76_s20 = sshll.u32 %s1300_s19, 4  ;;  %s49_s17 = int_to_ptr.vmem [resolvable:$true] %s48_s17  ;;  %s77_s20 = int_to_ptr.vmem [resolvable:$true] %s76_s20 }
  0x38   :  { %s1172_s23 = scalar_lea.hbm %s1485_s2, 1792 }
  0x39   :  { %p1173_p10 = scmp.ne.s32.totalorder %s1485_s2, %s1172_s23  ;;  %p1176_p11 = scmp.lt.u32.totalorder %s1172_s23, %s1485_s2 }
  0x3b   :  { %p1178_p12 = pnand %p1176_p11, %p1173_p10 }
  0x3d   :  { %1181 = shalt.err (!%p1178_p12)
}
  0x3e   :  { %s1182_s0 = scalar_lea.vmem %s49_s17, 1792  ;;  %p1187_p0 = scmp.lt.s32.totalorder %s49_s17, %s49_s17 }
  0x3f   :  { %p1183_p13 = scmp.ne.s32.totalorder %s49_s17, %s1182_s0  ;;  %p1188_p1 = scmp.lt.s32.totalorder %s1182_s0, %s1182_s0 }
  0x41   :  { %p1189_p2 = por %p1188_p1, %p1187_p0 }
  0x43   :  { %p1190_p3 = pnand %p1189_p2, %p1183_p13 }
  0x45   :  { %1193 = shalt.err (!%p1190_p3)
}
  0x46   :  { %54 = dma.hbm_to_vmem [thread:$0]  %s1485_s2, 1792, %s49_s17, [#allocation6], %s1297_s18, %s1297_s18, %s1298_s22  }
  0x47   :  { %s1194_s14 = scalar_lea.hbm %s1489_s6, 2048 }
  0x48   :  { %p1195_p4 = scmp.ne.s32.totalorder %s1489_s6, %s1194_s14  ;;  %p1198_p5 = scmp.lt.u32.totalorder %s1194_s14, %s1489_s6 }
  0x4a   :  { %p1200_p6 = pnand %p1198_p5, %p1195_p4 }
  0x4c   :  { %1203 = shalt.err (!%p1200_p6)
}
  0x4d   :  { %s1204_s19 = scalar_lea.vmem %s77_s20, 2048  ;;  %p1209_p8 = scmp.lt.s32.totalorder %s77_s20, %s77_s20 }
  0x4e   :  { %p1205_p7 = scmp.ne.s32.totalorder %s77_s20, %s1204_s19  ;;  %p1210_p9 = scmp.lt.s32.totalorder %s1204_s19, %s1204_s19 }
  0x50   :  { %p1211_p10 = por %p1210_p9, %p1209_p8 }
  0x52   :  { %p1212_p11 = pnand %p1211_p10, %p1205_p7 }
  0x54   :  { %1215 = shalt.err (!%p1212_p11)
}
  0x55   :  { %s1301_s2 = smov 64   ;;  %s1302_s18 = smov 4  }
  0x56   :  { %82 = dma.hbm_to_vmem [thread:$0]  %s1489_s6, 2048, %s77_s20, [#allocation9], %s1301_s2, %s1301_s2, %s1302_s18  }
  0x57   :  { %s1303_s21 = smov [#allocation11]   ;;  %s1216_s25 = scalar_lea.hbm %s1491_s8, 1024 }
  0x58   :  { %s90_s1 = sshll.u32 %s1303_s21, 4  ;;  %p1217_p12 = scmp.ne.s32.totalorder %s1491_s8, %s1216_s25  ;;  %s91_s1 = int_to_ptr.vmem [resolvable:$true] %s90_s1 }
  0x59   :  { %p1220_p13 = scmp.lt.u32.totalorder %s1216_s25, %s1491_s8 }
  0x5b   :  { %p1222_p0 = pnand %p1220_p13, %p1217_p12 }
  0x5d   :  { %1225 = shalt.err (!%p1222_p0)
}
  0x5e   :  { %s1226_s28 = scalar_lea.vmem %s91_s1, 1024  ;;  %p1231_p2 = scmp.lt.s32.totalorder %s91_s1, %s91_s1 }
  0x5f   :  { %p1227_p1 = scmp.ne.s32.totalorder %s91_s1, %s1226_s28  ;;  %p1232_p3 = scmp.lt.s32.totalorder %s1226_s28, %s1226_s28 }
  0x61   :  { %p1233_p4 = por %p1232_p3, %p1231_p2 }
  0x63   :  { %p1234_p5 = pnand %p1233_p4, %p1227_p1 }
  0x65   :  { %1237 = shalt.err (!%p1234_p5)
}
  0x66   :  { %96 = dma.hbm_to_vmem [thread:$0]  %s1491_s8, 1024, %s91_s1, [#allocation12], %s1301_s2, %s1301_s2, %s1302_s18  }
  0x67   :  { %1282 = dma.done.wait [#allocation3], 128  }
  0x68   :  { %1283 = vsyncadd [#allocation3], 4294967168 }
  0x69   :  { %1284 = dma.done.wait [#allocation6], 1920  }
  0x6a   :  { %1285 = vsyncadd [#allocation6], 4294965376 }
  0x6b   :  { %1286 = dma.done.wait [#allocation9], 6144  }
  0x6c   :  { %1287 = vsyncadd [#allocation9], 4294961152 }
  0x6d   :  { %1288 = dma.done.wait [#allocation12], 1024  }
  0x6e   :  { %1289 = vsyncadd [#allocation12], 4294966272  ;;  %v1304_v0 = vmov 0   ;;  %v1009_v1 = vld [vmem:[#allocation7 + $0x4] ss:$8 sps:$4 sm:$0xff]   ;;  %v118_v22 = vld [vmem:[#allocation2] sm:$0xff]  ;;  %v137_v60 = vlaneseq }
  0x6f   :  { %253 = vmatprep.mubr.bf16.mxu0 %v1304_v0  ;;  %v1011_v2 = vld [vmem:[#allocation7] ss:$8 sps:$4 sm:$0xff]   ;;  %221 = vmatprep.subr.bf16.mxu0 %v1009_v1  ;;  %v1012_v3 = vld [vmem:[#allocation7 + $0x14] ss:$8 sps:$4 sm:$0xff]   ;;  %v1014_v4 = vld [vmem:[#allocation7 + $0x10] ss:$8 sps:$4 sm:$0xff]  }
  0x70   :  { %222 = vmatpush1.bf16.msra.mxu0 %v1011_v2  ;;  %v1015_v5 = vld [vmem:[#allocation7 + $0x24] ss:$8 sps:$4 sm:$0xff]   ;;  %v1017_v6 = vld [vmem:[#allocation7 + $0x20] ss:$8 sps:$4 sm:$0xff]   ;;  %v1018_v7 = vld [vmem:[#allocation7 + $0x34] ss:$8 sps:$4 sm:$0xff]  }
  0x71   :  { %223 = vmatprep.subr.bf16.mxu0 %v1012_v3  ;;  %v1020_v8 = vld [vmem:[#allocation7 + $0x30] ss:$8 sps:$4 sm:$0xff]   ;;  %v1030_v9 = vld [vmem:[#allocation8 + $0x4] ss:$8 sps:$4 sm:$0xff]   ;;  %v1021_v11 = vld [vmem:[#allocation7 + $0x44] ss:$8 sps:$4 sm:$0xff]  }
  0x72   :  { %v1032_v10 = vld [vmem:[#allocation8] ss:$8 sps:$4 sm:$0xff]   ;;  %478 = vmatprep.subr.bf16.mxu1 %v1030_v9  ;;  %v1033_v12 = vld [vmem:[#allocation8 + $0x14] ss:$8 sps:$4 sm:$0xff]   ;;  %v1035_v13 = vld [vmem:[#allocation8 + $0x10] ss:$8 sps:$4 sm:$0xff]  }
  0x73   :  { %479 = vmatpush1.bf16.msra.mxu1 %v1032_v10  ;;  %v1036_v14 = vld [vmem:[#allocation8 + $0x24] ss:$8 sps:$4 sm:$0xff]   ;;  %v1023_v15 = vld [vmem:[#allocation7 + $0x40] ss:$8 sps:$4 sm:$0xff]   ;;  %v1038_v17 = vld [vmem:[#allocation8 + $0x20] ss:$8 sps:$4 sm:$0xff]  }
  0x74   :  { %224 = vmatpush1.bf16.msra.mxu0 %v1014_v4  ;;  %480 = vmatprep.subr.bf16.mxu1 %v1033_v12  ;;  %v1024_v16 = vld [vmem:[#allocation7 + $0x54] ss:$8 sps:$4 sm:$0xff]   ;;  %v1039_v18 = vld [vmem:[#allocation8 + $0x34] ss:$8 sps:$4 sm:$0xff]   ;;  %v1026_v19 = vld [vmem:[#allocation7 + $0x50] ss:$8 sps:$4 sm:$0xff]  }
  0x75   :  { %225 = vmatprep.subr.bf16.mxu0 %v1015_v5  ;;  %v1027_v20 = vld [vmem:[#allocation7 + $0x64] ss:$8 sps:$4 sm:$0xff]   ;;  %v1029_v21 = vld [vmem:[#allocation7 + $0x60] ss:$8 sps:$4 sm:$0xff]   ;;  %v1042_v24 = vld [vmem:[#allocation8 + $0x44] ss:$8 sps:$4 sm:$0xff]  }
  0x76   :  { %v1041_v23 = vld [vmem:[#allocation8 + $0x30] ss:$8 sps:$4 sm:$0xff]   ;;  %v119_v25 = vld [vmem:[#allocation5] sm:$0xff]  ;;  %v1045_v28 = vld [vmem:[#allocation8 + $0x54] ss:$8 sps:$4 sm:$0xff]   ;;  %vm217_vm0 = vcmask 916480  }
  0x77   :  { %481 = vmatpush1.bf16.msra.mxu1 %v1035_v13  ;;  %v1044_v26 = vld [vmem:[#allocation8 + $0x40] ss:$8 sps:$4 sm:$0xff]   ;;  %v120_v27 = vpack.c.bf16 %v119_v25, %v118_v22  ;;  %v1047_v29 = vld [vmem:[#allocation8 + $0x50] ss:$8 sps:$4 sm:$0xff]   ;;  %v1048_v30 = vld [vmem:[#allocation8 + $0x64] ss:$8 sps:$4 sm:$0xff]  }
  0x78   :  { %226 = vmatpush1.bf16.msra.mxu0 %v1017_v6  ;;  %482 = vmatprep.subr.bf16.mxu1 %v1036_v14  ;;  %v1050_v31 = vld [vmem:[#allocation8 + $0x60] ss:$8 sps:$4 sm:$0xff]   ;;  %v1051_v32 = vld [vmem:[#allocation8 + $0x74] ss:$8 sps:$4 sm:$0xff]   ;;  %v1053_v33 = vld [vmem:[#allocation8 + $0x70] ss:$8 sps:$4 sm:$0xff]  }
  0x79   :  { %227 = vmatprep.subr.bf16.mxu0 %v1018_v7  ;;  %v1054_v34 = vld [vmem:[#allocation8 + $0x84] ss:$8 sps:$4 sm:$0xff]   ;;  %v1056_v35 = vld [vmem:[#allocation8 + $0x80] ss:$8 sps:$4 sm:$0xff]   ;;  %v1057_v36 = vld [vmem:[#allocation8 + $0x94] ss:$8 sps:$4 sm:$0xff]  }
  0x7a   :  { %v1059_v37 = vld [vmem:[#allocation8 + $0x90] ss:$8 sps:$4 sm:$0xff]   ;;  %v1060_v38 = vld [vmem:[#allocation8 + $0xa4] ss:$8 sps:$4 sm:$0xff]   ;;  %v1062_v39 = vld [vmem:[#allocation8 + $0xa0] ss:$8 sps:$4 sm:$0xff]  }
  0x7b   :  { %483 = vmatpush1.bf16.msra.mxu1 %v1038_v17  ;;  %v1063_v40 = vld [vmem:[#allocation8 + $0xb4] ss:$8 sps:$4 sm:$0xff]   ;;  %v1065_v41 = vld [vmem:[#allocation8 + $0xb0] ss:$8 sps:$4 sm:$0xff]   ;;  %v1066_v42 = vld [vmem:[#allocation8 + $0xc4] ss:$8 sps:$4 sm:$0xff]  }
  0x7c   :  { %228 = vmatpush1.bf16.msra.mxu0 %v1020_v8  ;;  %484 = vmatprep.subr.bf16.mxu1 %v1039_v18  ;;  %v1068_v43 = vld [vmem:[#allocation8 + $0xc0] ss:$8 sps:$4 sm:$0xff]   ;;  %v1069_v44 = vld [vmem:[#allocation8 + $0xd4] ss:$8 sps:$4 sm:$0xff]   ;;  %v1071_v45 = vld [vmem:[#allocation8 + $0xd0] ss:$8 sps:$4 sm:$0xff]  }
  0x7d   :  { %229 = vmatprep.subr.bf16.mxu0 %v1021_v11  ;;  %v1072_v46 = vld [vmem:[#allocation8 + $0xe4] ss:$8 sps:$4 sm:$0xff]   ;;  %v1074_v47 = vld [vmem:[#allocation8 + $0xe0] ss:$8 sps:$4 sm:$0xff]   ;;  %v1075_v48 = vld [vmem:[#allocation8 + $0xf4] ss:$8 sps:$4 sm:$0xff]  }
  0x7e   :  { %v1077_v49 = vld [vmem:[#allocation8 + $0xf0] ss:$8 sps:$4 sm:$0xff]   ;;  %v1078_v50 = vld [vmem:[#allocation10 + $0x40] sm:$0xff]   ;;  %v1080_v52 = vld [vmem:[#allocation10 + $0x48] sm:$0xff]   ;;  %v138_v61 = vshrl.u32 %v137_v60, 7  ;;  %vm1306_vm1 = vmmov 0  }
  0x7f   :  { %485 = vmatpush1.bf16.msra.mxu1 %v1041_v23  ;;  %v1079_v51 = vld [vmem:[#allocation10] sm:$0xff]   ;;  %v1081_v53 = vld [vmem:[#allocation10 + $0x8] sm:$0xff]   ;;  %v1082_v54 = vld [vmem:[#allocation10 + $0x50] sm:$0xff]  }
  0x80   :  { %230 = vmatpush1.bf16.msra.mxu0 %v1023_v15  ;;  %486 = vmatprep.subr.bf16.mxu1 %v1042_v24  ;;  %v1083_v55 = vld [vmem:[#allocation10 + $0x10] sm:$0xff]   ;;  %v1084_v56 = vld [vmem:[#allocation10 + $0x58] sm:$0xff]   ;;  %v1086_v58 = vld [vmem:[#allocation10 + $0x60] sm:$0xff]   ;;  %v139_v62 = vsub.s32 0, %v138_v61  ;;  %v143_v0 = vsub.s32 1, %v138_v61 }
  0x81   :  { %231 = vmatprep.subr.bf16.mxu0 %v1024_v16  ;;  %v1085_v57 = vld [vmem:[#allocation10 + $0x18] sm:$0xff]   ;;  %v1087_v59 = vld [vmem:[#allocation10 + $0x20] sm:$0xff]   ;;  %v1089_v22 = vld [vmem:[#allocation10 + $0x28] sm:$0xff]  }
  0x82   :  { %v135_v63 = vld [vmem:[%s1486_s3] sm:$0x3]  ;;  %v1090_v23 = vld [vmem:[#allocation10 + $0x70] sm:$0xff]   ;;  %v1092_v25 = vld [vmem:[#allocation10 + $0x78] sm:$0xff]  }
  0x83   :  { %487 = vmatpush1.bf16.msra.mxu1 %v1044_v26  ;;  %v140_v1 = vrot.slane %v135_v63, %v139_v62  ;;  %v144_v2 = vrot.slane %v135_v63, %v143_v0  ;;  %v1091_v24 = vld [vmem:[#allocation10 + $0x30] sm:$0xff]   ;;  %v1093_v26 = vld [vmem:[#allocation10 + $0x38] sm:$0xff]  }
  0x84   :  { %232 = vmatpush1.bf16.msra.mxu0 %v1026_v19  ;;  %488 = vmatprep.subr.bf16.mxu1 %v1045_v28  ;;  %v306_v28 = vld [vmem:[%s1488_s5] sm:$0x3] }
  0x85   :  { %233 = vmatprep.subr.bf16.mxu0 %v1027_v20 }
  0x87   :  { %489 = vmatpush1.bf16.msra.mxu1 %v1047_v29  ;;  %v311_v29 = vrot.slane %v306_v28, %v139_v62 }
  0x88   :  { %234 = vmatpush1.bf16.msra.mxu0 %v1029_v21  ;;  %490 = vmatprep.subr.bf16.mxu1 %v1048_v30  ;;  %v1088_v21 = vld [vmem:[#allocation10 + $0x68] sm:$0xff]   ;;  %v315_v30 = vrot.slane %v306_v28, %v143_v0 }
  0x89   :  { %943 = vmatprep.subr.bf16.mxu0 %v1078_v50  ;;  %v1095_v50 = vld [vmem:[#allocation11 + $0x8] sm:$0xff]  }
  0x8b   :  { %884 = vmatmul.mubr.msk.bf16.vlgmr.msra.gmra.mrb[0].mxu0 %vm217_vm0, %v120_v27  ;;  %491 = vmatpush1.bf16.msra.mxu1 %v1050_v31  ;;  %v1305_v27 = vmov 0.0  }
  0x8c   :  { %492 = vmatprep.subr.bf16.mxu1 %v1051_v32  ;;  %944 = vmatpush3.bf16.msra.mxu0 %v1079_v51  ;;  %v1096_v51 = vld [vmem:[#allocation11 + $0x10] sm:$0xff]  }
  0x8d   :  { %945 = vmatprep.subr.bf16.mxu0 %v1080_v52  ;;  %v1097_v52 = vld [vmem:[#allocation11 + $0x18] sm:$0xff]  }
  0x8f   :  { %493 = vmatpush1.bf16.msra.mxu1 %v1053_v33 }
  0x90   :  { %494 = vmatprep.subr.bf16.mxu1 %v1054_v34  ;;  %946 = vmatpush3.bf16.msra.mxu0 %v1081_v53  ;;  %v1098_v53 = vld [vmem:[#allocation11 + $0x20] sm:$0xff]  }
  0x91   :  { %947 = vmatprep.subr.bf16.mxu0 %v1082_v54  ;;  %v1099_v54 = vld [vmem:[#allocation11 + $0x28] sm:$0xff]  }
  0x93   :  { %495 = vmatpush1.bf16.msra.mxu1 %v1056_v35 }
  0x94   :  { %496 = vmatprep.subr.bf16.mxu1 %v1057_v36  ;;  %948 = vmatpush3.bf16.msra.mxu0 %v1083_v55  ;;  %v1100_v55 = vld [vmem:[#allocation11 + $0x30] sm:$0xff]  }
  0x95   :  { %949 = vmatprep.subr.bf16.mxu0 %v1084_v56  ;;  %v1101_v56 = vld [vmem:[#allocation11 + $0x38] sm:$0xff]  }
  0x97   :  { %497 = vmatpush1.bf16.msra.mxu1 %v1059_v37 }
  0x98   :  { %498 = vmatprep.subr.bf16.mxu1 %v1060_v38  ;;  %950 = vmatpush3.bf16.msra.mxu0 %v1085_v57 }
  0x99   :  { %951 = vmatprep.subr.bf16.mxu0 %v1086_v58  ;;  %v917_v58 = vld [vmem:[%s1490_s7] ss:$0 sm:$0xff]  ;;  %s1307_s7 = smov [#allocation13]  }
  0x9a   :  { %s844_s30 = sshll.u32 %s1307_s7, 4  ;;  %s845_s30 = int_to_ptr.vmem [resolvable:$true] %s844_s30 }
  0x9b   :  { %499 = vmatpush1.bf16.msra.mxu1 %v1062_v39  ;;  %s1238_s19 = scalar_lea.vmem %s845_s30, 128  ;;  %p1243_p7 = scmp.lt.s32.totalorder %s845_s30, %s845_s30 }
  0x9c   :  { %500 = vmatprep.subr.bf16.mxu1 %v1063_v40  ;;  %952 = vmatpush3.bf16.msra.mxu0 %v1087_v59  ;;  %p1239_p6 = scmp.ne.s32.totalorder %s845_s30, %s1238_s19  ;;  %p1244_p8 = scmp.lt.s32.totalorder %s1238_s19, %s1238_s19 }
  0x9d   :  { %953 = vmatprep.subr.bf16.mxu0 %v1088_v21 }
  0x9e   :  { %p1245_p9 = por %p1244_p8, %p1243_p7 }
  0x9f   :  { %501 = vmatpush1.bf16.msra.mxu1 %v1065_v41 }
  0xa0   :  { %502 = vmatprep.subr.bf16.mxu1 %v1066_v42  ;;  %954 = vmatpush3.bf16.msra.mxu0 %v1089_v22  ;;  %p1246_p10 = pnand %p1245_p9, %p1239_p6 }
  0xa1   :  { %955 = vmatprep.subr.bf16.mxu0 %v1090_v23 }
  0xa3   :  { %503 = vmatpush1.bf16.msra.mxu1 %v1068_v43 }
  0xa4   :  { %504 = vmatprep.subr.bf16.mxu1 %v1069_v44  ;;  %956 = vmatpush3.bf16.msra.mxu0 %v1091_v24 }
  0xa5   :  { %957 = vmatprep.subr.bf16.mxu0 %v1092_v25 }
  0xa7   :  { %505 = vmatpush1.bf16.msra.mxu1 %v1071_v45 }
  0xa8   :  { %506 = vmatprep.subr.bf16.mxu1 %v1072_v46  ;;  %958 = vmatpush3.bf16.msra.mxu0 %v1093_v26 }
  0xa9   :  { %974 = vmatprep.subr.bf16.mxu0 %v1305_v27 }
  0xab   :  { %507 = vmatpush1.bf16.msra.mxu1 %v1074_v47 }
  0xac   :  { %508 = vmatprep.subr.bf16.mxu1 %v1075_v48 }
  0xaf   :  { %509 = vmatpush1.bf16.msra.mxu1 %v1077_v49  ;;  %v1094_v49 = vld [vmem:[#allocation11] sm:$0xff]  }
 0x15e   :  { %v255_v3 = vpop.f32.mrb[0].mxu0 }
 0x15f   :  { %v256_v4 = vadd.f32 %v255_v3, %v140_v1  ;;  %v257_v5 = vpop.f32.mrb[1].mxu0 }
 0x160   :  { %v258_v6 = vadd.f32 %v257_v5, %v144_v2  ;;  %v259_v7 = vpop.f32.mrb[2].mxu0 }
 0x161   :  { %v264_v8 = vmul.f32 0.1, %v256_v4  ;;  %v260_v9 = vadd.f32 %v259_v7, %v140_v1  ;;  %v261_v10 = vpop.f32.mrb[3].mxu0  ;;  %v934_v7 = vld [vmem:[%s1492_s9] ss:$0 sm:$0xff]  ;;  %s1308_s9 = smov [#allocation14]  }
 0x162   :  { %v265_v11 = vmul.f32 0.1, %v258_v6  ;;  %v262_v12 = vadd.f32 %v261_v10, %v144_v2  ;;  %s854_s16 = sshll.u32 %s1308_s9, 4  ;;  %s855_s16 = int_to_ptr.vmem [resolvable:$true] %s854_s16 }
 0x163   :  { %v266_v13 = vmul.f32 0.1, %v260_v9  ;;  %v268_v15 = vmax.f32 %v256_v4, %v264_v8 }
 0x164   :  { %v267_v14 = vmul.f32 0.1, %v262_v12  ;;  %v269_v17 = vmax.f32 %v258_v6, %v265_v11 }
 0x165   :  { %v270_v16 = vmax.f32 %v260_v9, %v266_v13 }
 0x166   :  { %v271_v18 = vmax.f32 %v262_v12, %v267_v14 }
 0x167   :  { %v272_v19 = vpack.c.bf16 %v270_v16, %v268_v15 }
 0x168   :  { %v273_v20 = vpack.c.bf16 %v271_v18, %v269_v17 }
 0x16a   :  { %510 = vmatprep.mubr.bf16.mxu1 %v273_v20 }
 0x16b   :  { %511 = vmatmul.mubr.bf16.vlgmr.msra.gmra.mrb[0].mxu1 %v272_v19 }
 0x23e   :  { %v512_v31 = vpop.f32.mrb[0].mxu1 }
 0x23f   :  { %v513_v32 = vadd.f32 %v512_v31, %v311_v29  ;;  %v514_v33 = vpop.f32.mrb[1].mxu1 }
 0x240   :  { %v515_v34 = vadd.f32 %v514_v33, %v315_v30  ;;  %v516_v35 = vpop.f32.mrb[2].mxu1 }
 0x241   :  { %v521_v36 = vmul.f32 0.1, %v513_v32  ;;  %v517_v37 = vadd.f32 %v516_v35, %v311_v29  ;;  %v518_v38 = vpop.f32.mrb[3].mxu1 }
 0x242   :  { %v522_v39 = vmul.f32 0.1, %v515_v34  ;;  %v519_v40 = vadd.f32 %v518_v38, %v315_v30 }
 0x243   :  { %v523_v41 = vmul.f32 0.1, %v517_v37  ;;  %v525_v43 = vmax.f32 %v513_v32, %v521_v36 }
 0x244   :  { %v524_v42 = vmul.f32 0.1, %v519_v40  ;;  %v526_v45 = vmax.f32 %v515_v34, %v522_v39 }
 0x245   :  { %v527_v44 = vmax.f32 %v517_v37, %v523_v41 }
 0x246   :  { %v528_v46 = vmax.f32 %v519_v40, %v524_v42 }
 0x247   :  { %v529_v47 = vpack.c.bf16 %v527_v44, %v525_v43 }
 0x248   :  { %v530_v48 = vpack.c.bf16 %v528_v46, %v526_v45 }
 0x24a   :  { %698 = vmatprep.mubr.bf16.mxu0 %v530_v48 }
 0x24b   :  { %699 = vmatmul.mubr.bf16.vlgmr.msra.gmra.mrb[4].mxu0 %v529_v47 }
 0x24c   :  { %975 = vmatpush3.bf16.msra.mxu0 %v1094_v49  ;;  %990 = vmatprep.mubr.msk.bf16.mxu0 %vm1306_vm1, %v1305_v27 }
 0x24d   :  { %976 = vmatprep.subr.bf16.mxu0 %v1305_v27 }
 0x250   :  { %977 = vmatpush3.bf16.msra.mxu0 %v1095_v50 }
 0x251   :  { %978 = vmatprep.subr.bf16.mxu0 %v1305_v27 }
 0x254   :  { %979 = vmatpush3.bf16.msra.mxu0 %v1096_v51 }
 0x255   :  { %980 = vmatprep.subr.bf16.mxu0 %v1305_v27 }
 0x258   :  { %981 = vmatpush3.bf16.msra.mxu0 %v1097_v52 }
 0x259   :  { %982 = vmatprep.subr.bf16.mxu0 %v1305_v27 }
 0x25c   :  { %983 = vmatpush3.bf16.msra.mxu0 %v1098_v53 }
 0x25d   :  { %984 = vmatprep.subr.bf16.mxu0 %v1305_v27 }
 0x260   :  { %985 = vmatpush3.bf16.msra.mxu0 %v1099_v54 }
 0x261   :  { %986 = vmatprep.subr.bf16.mxu0 %v1305_v27 }
 0x264   :  { %987 = vmatpush3.bf16.msra.mxu0 %v1100_v55 }
 0x265   :  { %988 = vmatprep.subr.bf16.mxu0 %v1305_v27 }
 0x268   :  { %989 = vmatpush3.bf16.msra.mxu0 %v1101_v56 }
 0x31e   :  { %v959_v57 = vpop.f32.mrb[4].mxu0 }
 0x31f   :  { %v960_v59 = vpop.f32.mrb[5].mxu0 }
 0x320   :  { %v961_v60 = vadd.f32 %v960_v59, %v959_v57  ;;  %v962_v61 = vpop.f32.mrb[6].mxu0 }
 0x321   :  { %v963_v62 = vpop.f32.mrb[7].mxu0 }
 0x322   :  { %v701_v63 = vadd.f32 %v961_v60, %v917_v58  ;;  %v964_v0 = vadd.f32 %v963_v62, %v962_v61 }
 0x324   :  { %v707_v1 = vmul.f32 0.1, %v701_v63  ;;  %v704_v2 = vadd.f32 %v964_v0, %v917_v58 }
 0x326   :  { %v708_v3 = vmul.f32 0.1, %v704_v2  ;;  %v709_v4 = vmax.f32 %v701_v63, %v707_v1 }
 0x328   :  { %v710_v5 = vmax.f32 %v704_v2, %v708_v3 }
 0x32a   :  { %v711_v6 = vpack.c.bf16 %v710_v5, %v709_v4 }
 0x32c   :  { %991 = vmatmul.mubr.bf16.vlgmr.msra.gmra.mrb[8].mxu0 %v711_v6 }
 0x3ff   :  { %v817_v8 = vpop.f32.mrb[8].mxu0 }
 0x400   :  { %v818_v9 = vadd.f32 %v934_v7, %v817_v8  ;;  %v992_v10 = vpop.f32.mrb[9].mxu0 }
 0x401   :  { %v820_v11 = vpop.f32.mrb[10].mxu0 }
 0x402   :  { %v821_v12 = vadd.f32 %v934_v7, %v820_v11  ;;  %v993_v13 = vpop.f32.mrb[11].mxu0  ;;  %v824_v14 = vmul.f32 %v818_v9, %v818_v9 }
 0x404   :  { %826 = vadd.xlane.f32.xlu0 %v824_v14  ;;  %v825_v15 = vmul.f32 %v821_v12, %v821_v12 }
 0x408   :  { %828 = vadd.xlane.f32.xlu0 %v825_v15 }
 0x491   :  { %v827_v16 = vpop.xlane.xlu0 %826 }
 0x492   :  { %v830_v17 = vmax.f32 %v827_v16, 1e-24 }
 0x494   :  { %1102 = vrsqrt.f32 %v830_v17 }
 0x495   :  { %v829_v18 = vpop.xlane.xlu0 %828 }
 0x496   :  { %v831_v19 = vmax.f32 %v829_v18, 1e-24 }
 0x498   :  { %1104 = vrsqrt.f32 %v831_v19 }
 0x49e   :  { %v1103_v20 = vpop.eup %1102 }
 0x49f   :  { %v834_v21 = vmul.f32 %v1103_v20, %v818_v9 }
 0x4a1   :  { %836 = vst [vmem:[#allocation13] sm:$0xff] %v834_v21 }
 0x4a2   :  { %v1105_v22 = vpop.eup %1104 }
 0x4a3   :  { %1249 = shalt.err (!%p1246_p10)
}
 0x4a4   :  { %s1250_s22 = scalar_lea.hbm %s1493_s10, 128 }
 0x4a5   :  { %p1251_p11 = scmp.ne.s32.totalorder %s1493_s10, %s1250_s22  ;;  %p1254_p12 = scmp.lt.u32.totalorder %s1250_s22, %s1493_s10 }
 0x4a7   :  { %p1256_p13 = pnand %p1254_p12, %p1251_p11 }
 0x4a9   :  { %1259 = shalt.err (!%p1256_p13)
}
 0x4aa   :  { %847 = dma.vmem_to_hbm [thread:$0]  %s845_s30, 128, %s1493_s10, [#allocation4]   ;;  %v835_v23 = vmul.f32 %v1105_v22, %v821_v12 }
 0x4ab   :  { %s1260_s26 = scalar_lea.vmem %s855_s16, 128  ;;  %p1265_p1 = scmp.lt.s32.totalorder %s855_s16, %s855_s16 }
 0x4ac   :  { %837 = vst [vmem:[#allocation14] sm:$0xff] %v835_v23  ;;  %p1261_p0 = scmp.ne.s32.totalorder %s855_s16, %s1260_s26  ;;  %p1266_p2 = scmp.lt.s32.totalorder %s1260_s26, %s1260_s26 }
 0x4ae   :  { %p1267_p3 = por %p1266_p2, %p1265_p1 }
 0x4b0   :  { %p1268_p4 = pnand %p1267_p3, %p1261_p0 }
 0x4b2   :  { %1271 = shalt.err (!%p1268_p4)
}
 0x4b3   :  { %s1272_s13 = scalar_lea.hbm %s1494_s11, 128 }
 0x4b4   :  { %p1273_p5 = scmp.ne.s32.totalorder %s1494_s11, %s1272_s13  ;;  %p1276_p6 = scmp.lt.u32.totalorder %s1272_s13, %s1494_s11 }
 0x4b6   :  { %p1278_p7 = pnand %p1276_p6, %p1273_p5 }
 0x4b8   :  { %1281 = shalt.err (!%p1278_p7)
}
 0x4b9   :  { %857 = dma.vmem_to_hbm [thread:$0]  %s855_s16, 128, %s1494_s11, [#allocation15]  }
 0x4ba   :  { %1290 = dma.done.wait [#allocation4], 128  }
 0x4bb   :  { %1291 = vsyncadd [#allocation4], 4294967168 }
 0x4bc   :  { %1292 = dma.done.wait [#allocation15], 128  }
 0x4bd   :  { %1293 = vsyncadd [#allocation15], 4294967168 }
 0x4be   :  { %864 = vsyncpa [#allocation3], 1 }
 0x4bf   :  { %865 = vsyncpa [#allocation6], 1 }
 0x4c0   :  { %866 = vsyncpa [#allocation9], 1 }
 0x4c1   :  { %867 = vsyncpa [#allocation12], 1 }
 0x4c2   :  { %868 = vsyncpa [#allocation4], 1 }
 0x4c3   :  { %869 = vsyncpa [#allocation15], 1 }

</bundles_post_ra>
